<compile_context>
chip_gen: v5e
topology: v5e:2x2
jax: 0.10.0
libtpu: 0.0.40
codegen_flags: <defaults>
</compile_context>

<pallas_src>
import functools

import jax
import jax.numpy as jnp
from jax.experimental import pallas as pl
from jax.experimental.pallas import tpu as pltpu

_LANES = 128
_SUBLANES = 8
_MAX_BLOCK_BYTES = 4 * 1024 * 1024  # one f32 input block (pre double-buffering)


def _round_up(x: int, m: int) -> int:
    return (x + m - 1) // m * m


def _bpr_partial_kernel(logit_ref, out_ref, *, tm: int, n_rows: int):
    """Partial sum of logsigmoid(diag - logit) over one (tm, B) row tile."""
    i = pl.program_id(0)
    row_start = i * tm                                         # global row offset

    x = logit_ref[...].astype(jnp.float32)                     # (tm, B)

    local_row = jax.lax.broadcasted_iota(jnp.int32, (tm, 1), 0)        # (tm, 1)
    global_row = local_row + row_start                                  # (tm, 1)
    col = jax.lax.broadcasted_iota(jnp.int32, x.shape, 1)               # (tm, B)

    # diag[r] = logit[global_r, global_r], built with a mask + row reduce
    # (the iota is offset by the global row index -> correct under tiling).
    diag = jnp.sum(jnp.where(col == global_row, x, 0.0), axis=1, keepdims=True)

    diff = diag - x                                             # (tm, B)

    # Numerically stable logsigmoid(diff).
    logsig = jnp.minimum(diff, 0.0) - jnp.log1p(jnp.exp(-jnp.abs(diff)))

    # Mask rows past the real batch size (last tile may be padded).
    valid = global_row < n_rows                                 # (tm, 1)
    logsig = jnp.where(valid, logsig, 0.0)

    tile_sum = jnp.sum(logsig)                                  # scalar f32

    # Lane-dense store: broadcast the partial sum over the whole (1, 8, 128)
    # output block so the store is an unmasked full-width vst.
    out_ref[...] = jnp.full(out_ref.shape, tile_sum, dtype=jnp.float32)


def bpr_loss(logit: jax.Array) -> jax.Array:
    """Pallas implementation of BPRLoss.forward. Returns a scalar (f32)."""
    B, B2 = logit.shape
    assert B == B2, "logit must be square (BxB)"

    pad_b = _round_up(B, _LANES)  # lane-padded width of one VMEM tile
    elt_bytes = 4                 # compute in f32 inside the kernel

    # Pick the row-tile size: whole matrix if small, else <= 512 rows, shrunk
    # until one f32 block fits the per-block VMEM budget.
    if B <= 512:
        tm = _round_up(B, _SUBLANES)
    else:
        tm = 512
    while tm > _SUBLANES and tm * pad_b * elt_bytes > _MAX_BLOCK_BYTES:
        tm = _round_up(tm // 2, _SUBLANES)

    num_tiles = (B + tm - 1) // tm

    kernel = functools.partial(_bpr_partial_kernel, tm=tm, n_rows=B)

    partials = pl.pallas_call(
        kernel,
        out_shape=jax.ShapeDtypeStruct((num_tiles, _SUBLANES, _LANES), jnp.float32),
        grid_spec=pltpu.PrefetchScalarGridSpec(
            num_scalar_prefetch=0,
            grid=(num_tiles,),
            in_specs=[pl.BlockSpec((tm, B), lambda i: (i, 0))],
            out_specs=pl.BlockSpec((1, _SUBLANES, _LANES), lambda i: (i, 0, 0)),
        ),
        compiler_params=pltpu.CompilerParams(
            dimension_semantics=("parallel",),       # independent tiles -> 2 TCs on v7x
            vmem_limit_bytes=48 * 1024 * 1024,       # explicit budget w/ headroom (v7x: 64 MiB phys)
        ),
        cost_estimate=pl.CostEstimate(
            flops=6 * B * B,
            transcendentals=2 * B * B,               # exp + log1p per element
            bytes_accessed=elt_bytes * B * B + num_tiles * _SUBLANES * _LANES * 4,
        ),
    )(logit)

    # Finalize (negate + mean over all B*B entries) in plain JAX; XLA fuses it.
    return -(jnp.sum(partials[:, 0, 0]) / (B * B))


def bpr_loss_ref(logit: jax.Array) -> jax.Array:
    """Pure-JAX reference mirroring the PyTorch forward."""
    diag = jnp.diag(logit).reshape(-1, 1)
    diff = diag - logit
    logsig = jnp.minimum(diff, 0.0) - jnp.log1p(jnp.exp(-jnp.abs(diff)))
    return -jnp.mean(logsig)


if __name__ == "__main__":
    key = jax.random.PRNGKey(0)

    # Primary demo shape (mini-batch of 8 -> (8, 8) logits, single tile).
    B = 8
    logit = jax.random.normal(key, (B, B), dtype=jnp.float32)
    loss = bpr_loss(logit)
    jax.block_until_ready(loss)
    ref = bpr_loss_ref(logit)
    assert jnp.allclose(loss, ref, atol=1e-5, rtol=1e-5), (loss, ref)

    # Extra checks: uneven batch (row masking) and multi-tile (offset diag +
    # parallel partial sums across row tiles).
    for B_extra, tol in ((10, 1e-5), (1030, 1e-4)):
        k = jax.random.fold_in(key, B_extra)
        x = jax.random.normal(k, (B_extra, B_extra), dtype=jnp.float32)
        got = bpr_loss(x)
        jax.block_until_ready(got)
        want = bpr_loss_ref(x)
        assert jnp.allclose(got, want, atol=tol, rtol=tol), (B_extra, got, want)

    print("KERNEL_OK")
</pallas_src>

<mosaic_0001>
module attributes {stable_mosaic.version = 11 : i64} {
  func.func @_bpr_partial_kernel(%arg0: i32, %arg1: memref<8x8xf32, #tpu.memory_space<vmem>>, %arg2: memref<1x8x128xf32, #tpu.memory_space<vmem>>) attributes {dimension_semantics = [#tpu.dimension_semantics<parallel>], iteration_bounds = array<i64: 1>, scalar_prefetch = 0 : i64, scratch_operands = 0 : i64, tpu.core_type = #tpu.core_type<tc>, window_params = [{transform_indices = @transform_0, window_bounds = array<i64: 8, 8>}, {transform_indices = @transform_1, window_bounds = array<i64: 1, 8, 128>}]} {
    %c8_i32 = arith.constant 8 : i32
    %0 = arith.muli %arg0, %c8_i32 : i32
    %c0 = arith.constant 0 : index
    %c0_0 = arith.constant 0 : index
    %1 = vector.load %arg1[%c0, %c0_0] : memref<8x8xf32, #tpu.memory_space<vmem>>, vector<8x8xf32>
    %2 = tpu.iota {dimensions = array<i32: 0>} : vector<8x1xi32>
    %3 = vector.broadcast %0 : i32 to vector<8x1xi32>
    %4 = arith.addi %2, %3 : vector<8x1xi32>
    %5 = tpu.iota {dimensions = array<i32: 1>} : vector<8x8xi32>
    %6 = vector.broadcast %4 : vector<8x1xi32> to vector<8x8xi32>
    %7 = arith.cmpi eq, %5, %6 : vector<8x8xi32>
    %cst = arith.constant 0.000000e+00 : f32
    %8 = vector.broadcast %cst : f32 to vector<8x8xf32>
    %9 = arith.select %7, %1, %8 : vector<8x8xi1>, vector<8x8xf32>
    %cst_1 = arith.constant dense<0.000000e+00> : vector<8xf32>
    %10 = vector.multi_reduction <add>, %9, %cst_1 [1] : vector<8x8xf32> to vector<8xf32>
    %11 = vector.shape_cast %10 : vector<8xf32> to vector<8x1xf32>
    %12 = vector.broadcast %11 : vector<8x1xf32> to vector<8x8xf32>
    %13 = arith.subf %12, %1 : vector<8x8xf32>
    %cst_2 = arith.constant 0.000000e+00 : f32
    %14 = vector.broadcast %cst_2 : f32 to vector<8x8xf32>
    %15 = arith.minimumf %13, %14 : vector<8x8xf32>
    %16 = math.absf %13 : vector<8x8xf32>
    %cst_3 = arith.constant 0.000000e+00 : f32
    %17 = vector.broadcast %cst_3 : f32 to vector<8x8xf32>
    %18 = arith.subf %17, %16 : vector<8x8xf32>
    %19 = math.exp %18 : vector<8x8xf32>
    %20 = math.log1p %19 : vector<8x8xf32>
    %21 = arith.subf %15, %20 : vector<8x8xf32>
    %c8_i32_4 = arith.constant 8 : i32
    %22 = vector.broadcast %c8_i32_4 : i32 to vector<8x1xi32>
    %23 = arith.cmpi slt, %4, %22 : vector<8x1xi32>
    %cst_5 = arith.constant 0.000000e+00 : f32
    %24 = vector.shape_cast %23 : vector<8x1xi1> to vector<8x1xi1>
    %25 = vector.broadcast %24 : vector<8x1xi1> to vector<8x8xi1>
    %26 = vector.broadcast %cst_5 : f32 to vector<8x8xf32>
    %27 = arith.select %25, %21, %26 : vector<8x8xi1>, vector<8x8xf32>
    %28 = vector.shape_cast %27 : vector<8x8xf32> to vector<1x8x8xf32>
    %cst_6 = arith.constant dense<0.000000e+00> : vector<1xf32>
    %29 = vector.multi_reduction <add>, %28, %cst_6 [1, 2] : vector<1x8x8xf32> to vector<1xf32>
    %30 = vector.shape_cast %29 : vector<1xf32> to vector<1x1x1xf32>
    %31 = vector.extract %30[0, 0, 0] : f32 from vector<1x1x1xf32>
    %32 = vector.broadcast %31 : f32 to vector<1x8x128xf32>
    %c0_7 = arith.constant 0 : index
    %c0_8 = arith.constant 0 : index
    %c0_9 = arith.constant 0 : index
    %33 = vector.load %arg2[%c0_7, %c0_8, %c0_9] : memref<1x8x128xf32, #tpu.memory_space<vmem>>, vector<1x8x128xf32>
    tpu.vector_store %arg2[%c0_7, %c0_8, %c0_9], %32 {strides = array<i32>} : memref<1x8x128xf32, #tpu.memory_space<vmem>>, vector<1x8x128xf32>,
    return
  }
  func.func @transform_0(%arg0: i32) -> (i32, i32) {
    %c0_i32 = arith.constant 0 : i32
    %c0_i32_0 = arith.constant 0 : i32
    return %arg0, %c0_i32 : i32, i32
  }
  func.func @transform_1(%arg0: i32) -> (i32, i32, i32) {
    %c0_i32 = arith.constant 0 : i32
    %c0_i32_0 = arith.constant 0 : i32
    %c0_i32_1 = arith.constant 0 : i32
    return %arg0, %c0_i32, %c0_i32_0 : i32, i32, i32
  }
}

</mosaic_0001>

<bundles_post_ra>
// kernel: tpu_custom_call.1
= control target key start
LH: loop header
LB: loop body
LE: loop exit
PB: predicated region body
PF: predicated region fallthrough
CT: control target
= control target key end

     0   :  { %6 = vsyncpa [#allocation3], 0  ;;  %s166_s0 = inlined_call_operand.hbm [shape: f32[8,8], index: 0, kind: input, shape index: {}]   ;;  %s167_s1 = inlined_call_operand.hbm [shape: f32[1,8,128], index: 1, kind: output, shape index: {}]  }
   0x1   :  { %7 = vsyncpa [#allocation4], 0  ;;  %s13_s8 = sshll.u32 %s166_s0, 4  ;;  %s146_s9 = smov [#allocation2]   ;;  %s14_s8 = int_to_ptr.hbm [resolvable:$true] %s13_s8 }
   0x2   :  { %s15_s10 = sshll.u32 %s146_s9, 4  ;;  %s16_s10 = int_to_ptr.vmem [resolvable:$true] %s15_s10 }
   0x3   :  { %18 = dma.hbm_to_vmem [thread:$0]  %s14_s8, 128, %s16_s10, [#allocation3]  }
   0x4   :  { %142 = dma.done.wait [#allocation3], 128  }
   0x5   :  { %143 = vsyncadd [#allocation3], 4294967168  ;;  %v25_v0 = vlaneseq  ;;  %vm33_vm1 = vcmask 64512   ;;  %v24_v3 = vld [vmem:[#allocation2] sm:$0xff]  ;;  %s147_s0 = smov [#allocation5]   ;;  %s76_s14 = sshll.u32 %s167_s1, 4  ;;  %s77_s14 = int_to_ptr.hbm [resolvable:$true] %s76_s14 }
   0x6   :  { %s74_s11 = sshll.u32 %s147_s0, 4  ;;  %s75_s11 = int_to_ptr.vmem [resolvable:$true] %s74_s11 }
   0x7   :  { %v26_v1 = vshrl.u32 %v25_v0, 7  ;;  %v30_v2 = vand.u32 127, %v25_v0 }
   0x9   :  { %vm31_vm0 = vcmp.eq.s32.totalorder %v30_v2, %v26_v1 }
   0xa   :  { %v32_v4 = vsel %vm31_vm0, %v24_v3, 0.0 }
   0xb   :  { %v34_v5 = vsel %vm33_vm1, %v32_v4, 0.0 }
   0xc   :  { %35 = vadd.xlane.f32.xlu0 %v34_v5 }
  0x7f   :  { %v36_v6 = vpop.xlane.xlu0 %35 }
  0x80   :  { %v37_v7 = vsub.f32 %v36_v6, %v24_v3 }
  0x82   :  { %v39_v8 = vand.u32 2147483647, %v37_v7  ;;  %v38_v19 = vmin.f32 %v37_v7, 0.0 }
  0x84   :  { %v40_v9 = vsub.f32 0.0, %v39_v8 }
  0x86   :  { %v41_v10 = vmul.f32 1.442695, %v40_v9 }
  0x88   :  { %90 = vpow2.f32 %v41_v10 }
  0x8e   :  { %v91_v11 = vpop.eup %90 }
  0x8f   :  { %v43_v12 = vadd.f32 1.0, %v91_v11  ;;  %v46_v13 = vmul.f32 -0.5, %v91_v11  ;;  %v49_v15 = vand.u32 2147483647, %v91_v11 }
  0x91   :  { %92 = vlog2.f32 %v43_v12  ;;  %v47_v14 = vadd.f32 1.0, %v46_v13  ;;  %vm50_vm2 = vcmp.lt.f32.partialorder %v49_v15, 0.0004427343 }
  0x93   :  { %v48_v18 = vmul.f32 %v91_v11, %v47_v14 }
  0x97   :  { %v93_v16 = vpop.eup %92 }
  0x98   :  { %v45_v17 = vmul.f32 0.6931472, %v93_v16 }
  0x9a   :  { %v51_v20 = vsel %vm50_vm2, %v48_v18, %v45_v17 }
  0x9b   :  { %v52_v21 = vsub.f32 %v38_v19, %v51_v20 }
  0x9d   :  { %v57_v22 = vsel %vm33_vm1, %v52_v21, 0.0 }
  0x9e   :  { %58 = vadd.xlane.f32.xlu0 %v57_v22 }
 0x111   :  { %v59_v23 = vpop.xlane.xlu0 %58 }
 0x112   :  { %v60_v24 = vrot.slane %v59_v23, 4 }
 0x114   :  { %v61_v25 = vadd.f32 %v60_v24, %v59_v23 }
 0x116   :  { %v62_v26 = vrot.slane %v61_v25, 2 }
 0x118   :  { %v63_v27 = vadd.f32 %v62_v26, %v61_v25 }
 0x11a   :  { %v64_v28 = vrot.slane %v63_v27, 1 }
 0x11c   :  { %v65_v29 = vadd.f32 %v64_v28, %v63_v27 }
 0x11e   :  { %86 = vpush %v65_v29 }
 0x14f   :  { %s87_s15 = spop %86 }
 0x150   :  { %v67_v30 = vstv %s87_s15 }
 0x151   :  { %68 = vst [vmem:[#allocation5] sm:$0xff] %v67_v30 }
 0x152   :  { %79 = dma.vmem_to_hbm [thread:$0]  %s75_s11, 128, %s77_s14, [#allocation4]  }
 0x153   :  { %144 = dma.done.wait [#allocation4], 128  }
 0x154   :  { %145 = vsyncadd [#allocation4], 4294967168 }
 0x155   :  { %84 = vsyncpa [#allocation3], 1 }
 0x156   :  { %85 = vsyncpa [#allocation4], 1 }

</bundles_post_ra>
